<compile_context>
chip_gen: v6e
topology: v6e:2x2x1
jax: 0.10.0
libtpu: 0.0.40
codegen_flags: <defaults>
</compile_context>

<pallas_src>
import functools

import jax
import jax.numpy as jnp
from jax.experimental import pallas as pl
from jax.experimental.pallas import tpu as pltpu

BN_EPS = 1e-5
LEAKY_SLOPE = 0.01  # PyTorch F.leaky_relu default
LANE = 128


def _leaky_relu(x):
    return jnp.where(x > 0, x, LEAKY_SLOPE * x)


def _round_up(a, b):
    return (a + b - 1) // b * b


def actor_kernel(x_ref, scale_ref, shift_ref,
                 w1_ref, b1_ref, w2_ref, b2_ref, w3_ref, b3_ref,
                 out_ref):
    # Folded BatchNorm: one fused scale/shift per feature (f32 on the VPU).
    xn = x_ref[...] * scale_ref[...] + shift_ref[...]            # (bm, S) f32

    # fc1 + leaky_relu : bf16 MXU operands, f32 accumulation.
    h1 = jnp.dot(xn.astype(jnp.bfloat16), w1_ref[...],
                 preferred_element_type=jnp.float32) + b1_ref[...]
    h1 = _leaky_relu(h1)

    # fc2 + leaky_relu
    h2 = jnp.dot(h1.astype(jnp.bfloat16), w2_ref[...],
                 preferred_element_type=jnp.float32) + b2_ref[...]
    h2 = _leaky_relu(h2)

    # fc3 (output columns padded to a lane-dense 128) + tanh
    h3 = jnp.dot(h2.astype(jnp.bfloat16), w3_ref[...],
                 preferred_element_type=jnp.float32) + b3_ref[...]
    out_ref[...] = jnp.tanh(h3).astype(out_ref.dtype)


@functools.partial(jax.jit, static_argnames=("block_m",))
def module_actor_forward(x, params, *, block_m=256):
    """x: (B, state_size) f32. params: dict of arrays. Returns (B, action_size)."""
    x = x.astype(jnp.float32)
    B, S = x.shape
    H = params["w1"].shape[1]
    A = params["w3"].shape[1]
    A_pad = _round_up(max(A, LANE), LANE)

    # ---- BatchNorm1d, training-mode full-batch statistics (biased variance),
    # hoisted out of the kernel and folded into one scale/shift so batch tiling
    # cannot change the statistics (per review correctness note).
    mean = jnp.mean(x, axis=0, keepdims=True)                       # (1, S)
    var = jnp.mean(jnp.square(x - mean), axis=0, keepdims=True)     # (1, S)
    scale = params["gamma"] * jax.lax.rsqrt(var + BN_EPS)           # (1, S)
    shift = params["beta"] - mean * scale                           # (1, S)

    # ---- weights as bf16 MXU operands; pad fc3 outputs to lane-dense width.
    w1 = params["w1"].astype(jnp.bfloat16)                          # (S, H)
    w2 = params["w2"].astype(jnp.bfloat16)                          # (H, H)
    w3 = jnp.zeros((H, A_pad), jnp.bfloat16).at[:, :A].set(
        params["w3"].astype(jnp.bfloat16))                          # (H, A_pad)
    b1 = params["b1"].astype(jnp.float32)                           # (1, H)
    b2 = params["b2"].astype(jnp.float32)                           # (1, H)
    b3 = jnp.zeros((1, A_pad), jnp.float32).at[:, :A].set(
        params["b3"].astype(jnp.float32))                           # (1, A_pad)

    # ---- batch tiling: largest block up to block_m rows, multiple of 8 sublanes.
    bm = _round_up(min(block_m, _round_up(B, 8)), 8)
    Bp = _round_up(B, bm)
    if Bp != B:
        x = jnp.pad(x, ((0, Bp - B), (0, 0)))

    out = pl.pallas_call(
        actor_kernel,
        out_shape=jax.ShapeDtypeStruct((Bp, A_pad), jnp.float32),
        grid=(Bp // bm,),
        in_specs=[
            pl.BlockSpec((bm, S), lambda i: (i, 0)),       # x          (tiled)
            pl.BlockSpec((1, S), lambda i: (0, 0)),        # scale      (resident)
            pl.BlockSpec((1, S), lambda i: (0, 0)),        # shift      (resident)
            pl.BlockSpec((S, H), lambda i: (0, 0)),        # w1         (resident)
            pl.BlockSpec((1, H), lambda i: (0, 0)),        # b1         (resident)
            pl.BlockSpec((H, H), lambda i: (0, 0)),        # w2         (resident)
            pl.BlockSpec((1, H), lambda i: (0, 0)),        # b2         (resident)
            pl.BlockSpec((H, A_pad), lambda i: (0, 0)),    # w3 padded  (resident)
            pl.BlockSpec((1, A_pad), lambda i: (0, 0)),    # b3 padded  (resident)
        ],
        out_specs=pl.BlockSpec((bm, A_pad), lambda i: (i, 0)),
        compiler_params=pltpu.CompilerParams(
            dimension_semantics=("parallel",)),
    )(x, scale, shift, w1, b1, w2, b2, w3, b3)

    return out[:B, :A]


def init_params(key, state_size, action_size, hidden=128):
    """Deterministic parameter init mirroring ModuleActor.reset_parameters shapes."""
    ks = jax.random.split(key, 6)
    # hidden_init uses weight.size()[0] == out_features -> lim = 1/sqrt(out_features)
    lim1 = 1.0 / jnp.sqrt(jnp.float32(hidden))
    lim2 = 1.0 / jnp.sqrt(jnp.float32(hidden))
    lim3 = 0.003

    w1 = jax.random.uniform(ks[0], (state_size, hidden), jnp.float32, -lim1, lim1)
    w2 = jax.random.uniform(ks[1], (hidden, hidden), jnp.float32, -lim2, lim2)
    w3 = jax.random.uniform(ks[2], (hidden, action_size), jnp.float32, -lim3, lim3)
    # biases: PyTorch default Linear bias init U(-1/sqrt(fan_in), 1/sqrt(fan_in))
    b1 = jax.random.uniform(ks[3], (1, hidden), jnp.float32,
                            -1.0 / jnp.sqrt(jnp.float32(state_size)),
                            1.0 / jnp.sqrt(jnp.float32(state_size)))
    b2 = jax.random.uniform(ks[4], (1, hidden), jnp.float32,
                            -1.0 / jnp.sqrt(jnp.float32(hidden)),
                            1.0 / jnp.sqrt(jnp.float32(hidden)))
    b3 = jax.random.uniform(ks[5], (1, action_size), jnp.float32,
                            -1.0 / jnp.sqrt(jnp.float32(hidden)),
                            1.0 / jnp.sqrt(jnp.float32(hidden)))
    gamma = jnp.ones((1, state_size), jnp.float32)   # BatchNorm1d affine gamma
    beta = jnp.zeros((1, state_size), jnp.float32)   # BatchNorm1d affine beta
    return dict(gamma=gamma, beta=beta, w1=w1, b1=b1, w2=w2, b2=b2, w3=w3, b3=b3)


def reference_forward(x, p):
    """Plain-JAX f32 reference (PyTorch training-mode semantics)."""
    mean = jnp.mean(x, axis=0, keepdims=True)
    var = jnp.mean((x - mean) ** 2, axis=0, keepdims=True)
    xn = (x - mean) / jnp.sqrt(var + BN_EPS) * p["gamma"] + p["beta"]
    h1 = _leaky_relu(xn @ p["w1"] + p["b1"])
    h2 = _leaky_relu(h1 @ p["w2"] + p["b2"])
    return jnp.tanh(h2 @ p["w3"] + p["b3"])


if __name__ == "__main__":
    key = jax.random.PRNGKey(0)
    k_x, k_p = jax.random.split(key)

    batch = 8
    state_size = 32
    action_size = 4

    x = jax.random.normal(k_x, (batch, state_size), jnp.float32)
    params = init_params(k_p, state_size, action_size)

    out = module_actor_forward(x, params)
    out = jax.block_until_ready(out)

    ref = reference_forward(x, params)
    assert out.shape == (batch, action_size)
    # bf16 MXU operands with f32 accumulation -> loosened tolerance vs f32 ref.
    assert jnp.allclose(out, ref, atol=1e-2, rtol=1e-2), "mismatch vs reference"

    print("KERNEL_OK")
</pallas_src>

<mosaic_0001>
module attributes {stable_mosaic.version = 11 : i64} {
  func.func @actor_kernel(%arg0: i32, %arg1: memref<8x32xf32, #tpu.memory_space<vmem>>, %arg2: memref<1x32xf32, #tpu.memory_space<vmem>>, %arg3: memref<1x32xf32, #tpu.memory_space<vmem>>, %arg4: memref<32x128xbf16, #tpu.memory_space<vmem>>, %arg5: memref<1x128xf32, #tpu.memory_space<vmem>>, %arg6: memref<128x128xbf16, #tpu.memory_space<vmem>>, %arg7: memref<1x128xf32, #tpu.memory_space<vmem>>, %arg8: memref<128x128xbf16, #tpu.memory_space<vmem>>, %arg9: memref<1x128xf32, #tpu.memory_space<vmem>>, %arg10: memref<8x128xf32, #tpu.memory_space<vmem>>) attributes {dimension_semantics = [#tpu.dimension_semantics<parallel>], iteration_bounds = array<i64: 1>, scalar_prefetch = 0 : i64, scratch_operands = 0 : i64, tpu.core_type = #tpu.core_type<tc>, window_params = [{transform_indices = @transform_0, window_bounds = array<i64: 8, 32>}, {pipeline_mode = #tpu.pipeline_mode<synchronous>, transform_indices = @transform_1, window_bounds = array<i64: 1, 32>}, {pipeline_mode = #tpu.pipeline_mode<synchronous>, transform_indices = @transform_2, window_bounds = array<i64: 1, 32>}, {pipeline_mode = #tpu.pipeline_mode<synchronous>, transform_indices = @transform_3, window_bounds = array<i64: 32, 128>}, {pipeline_mode = #tpu.pipeline_mode<synchronous>, transform_indices = @transform_4, window_bounds = array<i64: 1, 128>}, {pipeline_mode = #tpu.pipeline_mode<synchronous>, transform_indices = @transform_5, window_bounds = array<i64: 128, 128>}, {pipeline_mode = #tpu.pipeline_mode<synchronous>, transform_indices = @transform_6, window_bounds = array<i64: 1, 128>}, {pipeline_mode = #tpu.pipeline_mode<synchronous>, transform_indices = @transform_7, window_bounds = array<i64: 128, 128>}, {pipeline_mode = #tpu.pipeline_mode<synchronous>, transform_indices = @transform_8, window_bounds = array<i64: 1, 128>}, {transform_indices = @transform_9, window_bounds = array<i64: 8, 128>}]} {
    %c0 = arith.constant 0 : index
    %c0_0 = arith.constant 0 : index
    %0 = vector.load %arg1[%c0, %c0_0] : memref<8x32xf32, #tpu.memory_space<vmem>>, vector<8x32xf32>
    %c0_1 = arith.constant 0 : index
    %c0_2 = arith.constant 0 : index
    %1 = vector.load %arg2[%c0_1, %c0_2] : memref<1x32xf32, #tpu.memory_space<vmem>>, vector<1x32xf32>
    %2 = vector.broadcast %1 : vector<1x32xf32> to vector<8x32xf32>
    %3 = arith.mulf %0, %2 : vector<8x32xf32>
    %c0_3 = arith.constant 0 : index
    %c0_4 = arith.constant 0 : index
    %4 = vector.load %arg3[%c0_3, %c0_4] : memref<1x32xf32, #tpu.memory_space<vmem>>, vector<1x32xf32>
    %5 = vector.broadcast %4 : vector<1x32xf32> to vector<8x32xf32>
    %6 = arith.addf %3, %5 : vector<8x32xf32>
    %7 = arith.truncf %6 : vector<8x32xf32> to vector<8x32xbf16>
    %c0_5 = arith.constant 0 : index
    %c0_6 = arith.constant 0 : index
    %8 = vector.load %arg4[%c0_5, %c0_6] : memref<32x128xbf16, #tpu.memory_space<vmem>>, vector<32x128xbf16>
    %cst = arith.constant dense<0.000000e+00> : vector<8x128xf32>
    %9 = tpu.matmul %7, %8, %cst {dimension_numbers = #tpu.dot_dimension_numbers<[1], [0], [0], [1], [0, 0, 1, 1], [], []>} : vector<8x32xbf16>, vector<32x128xbf16>, vector<8x128xf32> -> vector<8x128xf32>
    %c0_7 = arith.constant 0 : index
    %c0_8 = arith.constant 0 : index
    %10 = vector.load %arg5[%c0_7, %c0_8] : memref<1x128xf32, #tpu.memory_space<vmem>>, vector<1x128xf32>
    %11 = vector.broadcast %10 : vector<1x128xf32> to vector<8x128xf32>
    %12 = arith.addf %9, %11 : vector<8x128xf32>
    %cst_9 = arith.constant 0.000000e+00 : f32
    %13 = vector.broadcast %cst_9 : f32 to vector<8x128xf32>
    %14 = arith.cmpf ogt, %12, %13 : vector<8x128xf32>
    %cst_10 = arith.constant 0.00999999977 : f32
    %15 = vector.broadcast %cst_10 : f32 to vector<8x128xf32>
    %16 = arith.mulf %15, %12 : vector<8x128xf32>
    %17 = arith.select %14, %12, %16 : vector<8x128xi1>, vector<8x128xf32>
    %18 = arith.truncf %17 : vector<8x128xf32> to vector<8x128xbf16>
    %c0_11 = arith.constant 0 : index
    %c0_12 = arith.constant 0 : index
    %19 = vector.load %arg6[%c0_11, %c0_12] : memref<128x128xbf16, #tpu.memory_space<vmem>>, vector<128x128xbf16>
    %cst_13 = arith.constant dense<0.000000e+00> : vector<8x128xf32>
    %20 = tpu.matmul %18, %19, %cst_13 {dimension_numbers = #tpu.dot_dimension_numbers<[1], [0], [0], [1], [0, 0, 1, 1], [], []>} : vector<8x128xbf16>, vector<128x128xbf16>, vector<8x128xf32> -> vector<8x128xf32>
    %c0_14 = arith.constant 0 : index
    %c0_15 = arith.constant 0 : index
    %21 = vector.load %arg7[%c0_14, %c0_15] : memref<1x128xf32, #tpu.memory_space<vmem>>, vector<1x128xf32>
    %22 = vector.broadcast %21 : vector<1x128xf32> to vector<8x128xf32>
    %23 = arith.addf %20, %22 : vector<8x128xf32>
    %cst_16 = arith.constant 0.000000e+00 : f32
    %24 = vector.broadcast %cst_16 : f32 to vector<8x128xf32>
    %25 = arith.cmpf ogt, %23, %24 : vector<8x128xf32>
    %cst_17 = arith.constant 0.00999999977 : f32
    %26 = vector.broadcast %cst_17 : f32 to vector<8x128xf32>
    %27 = arith.mulf %26, %23 : vector<8x128xf32>
    %28 = arith.select %25, %23, %27 : vector<8x128xi1>, vector<8x128xf32>
    %29 = arith.truncf %28 : vector<8x128xf32> to vector<8x128xbf16>
    %c0_18 = arith.constant 0 : index
    %c0_19 = arith.constant 0 : index
    %30 = vector.load %arg8[%c0_18, %c0_19] : memref<128x128xbf16, #tpu.memory_space<vmem>>, vector<128x128xbf16>
    %cst_20 = arith.constant dense<0.000000e+00> : vector<8x128xf32>
    %31 = tpu.matmul %29, %30, %cst_20 {dimension_numbers = #tpu.dot_dimension_numbers<[1], [0], [0], [1], [0, 0, 1, 1], [], []>} : vector<8x128xbf16>, vector<128x128xbf16>, vector<8x128xf32> -> vector<8x128xf32>
    %c0_21 = arith.constant 0 : index
    %c0_22 = arith.constant 0 : index
    %32 = vector.load %arg9[%c0_21, %c0_22] : memref<1x128xf32, #tpu.memory_space<vmem>>, vector<1x128xf32>
    %33 = vector.broadcast %32 : vector<1x128xf32> to vector<8x128xf32>
    %34 = arith.addf %31, %33 : vector<8x128xf32>
    %35 = math.tanh %34 : vector<8x128xf32>
    %c0_23 = arith.constant 0 : index
    %c0_24 = arith.constant 0 : index
    %36 = vector.load %arg10[%c0_23, %c0_24] : memref<8x128xf32, #tpu.memory_space<vmem>>, vector<8x128xf32>
    tpu.vector_store %arg10[%c0_23, %c0_24], %35 {strides = array<i32>} : memref<8x128xf32, #tpu.memory_space<vmem>>, vector<8x128xf32>,
    return
  }
  func.func @transform_0(%arg0: i32) -> (i32, i32) {
    %c0_i32 = arith.constant 0 : i32
    %c0_i32_0 = arith.constant 0 : i32
    return %arg0, %c0_i32 : i32, i32
  }
  func.func @transform_1(%arg0: i32) -> (i32, i32) {
    %c0_i32 = arith.constant 0 : i32
    %c0_i32_0 = arith.constant 0 : i32
    %c0_i32_1 = arith.constant 0 : i32
    return %c0_i32, %c0_i32_0 : i32, i32
  }
  func.func @transform_2(%arg0: i32) -> (i32, i32) {
    %c0_i32 = arith.constant 0 : i32
    %c0_i32_0 = arith.constant 0 : i32
    %c0_i32_1 = arith.constant 0 : i32
    return %c0_i32, %c0_i32_0 : i32, i32
  }
  func.func @transform_3(%arg0: i32) -> (i32, i32) {
    %c0_i32 = arith.constant 0 : i32
    %c0_i32_0 = arith.constant 0 : i32
    %c0_i32_1 = arith.constant 0 : i32
    return %c0_i32, %c0_i32_0 : i32, i32
  }
  func.func @transform_4(%arg0: i32) -> (i32, i32) {
    %c0_i32 = arith.constant 0 : i32
    %c0_i32_0 = arith.constant 0 : i32
    %c0_i32_1 = arith.constant 0 : i32
    return %c0_i32, %c0_i32_0 : i32, i32
  }
  func.func @transform_5(%arg0: i32) -> (i32, i32) {
    %c0_i32 = arith.constant 0 : i32
    %c0_i32_0 = arith.constant 0 : i32
    %c0_i32_1 = arith.constant 0 : i32
    return %c0_i32, %c0_i32_0 : i32, i32
  }
  func.func @transform_6(%arg0: i32) -> (i32, i32) {
    %c0_i32 = arith.constant 0 : i32
    %c0_i32_0 = arith.constant 0 : i32
    %c0_i32_1 = arith.constant 0 : i32
    return %c0_i32, %c0_i32_0 : i32, i32
  }
  func.func @transform_7(%arg0: i32) -> (i32, i32) {
    %c0_i32 = arith.constant 0 : i32
    %c0_i32_0 = arith.constant 0 : i32
    %c0_i32_1 = arith.constant 0 : i32
    return %c0_i32, %c0_i32_0 : i32, i32
  }
  func.func @transform_8(%arg0: i32) -> (i32, i32) {
    %c0_i32 = arith.constant 0 : i32
    %c0_i32_0 = arith.constant 0 : i32
    %c0_i32_1 = arith.constant 0 : i32
    return %c0_i32, %c0_i32_0 : i32, i32
  }
  func.func @transform_9(%arg0: i32) -> (i32, i32) {
    %c0_i32 = arith.constant 0 : i32
    %c0_i32_0 = arith.constant 0 : i32
    return %arg0, %c0_i32 : i32, i32
  }
}

</mosaic_0001>

<bundles_post_ra>
// kernel: module_actor_forward.1
= control target key start
LH: loop header
LB: loop body
LE: loop exit
PB: predicated region body
PF: predicated region fallthrough
CT: control target
= control target key end

     0   :  { %v469_v0 = vmov 0.0   ;;  %vm470_vm0 = vmmov 0   ;;  %vm74_vm1 = vcmask 261120   ;;  %s620_s3 = inlined_call_operand.vmem [shape: bf16[32,128], index: 3, kind: input, shape index: {}]   ;;  %s621_s0 = inlined_call_operand.vmem [shape: f32[8,32], index: 0, kind: input, shape index: {}]   ;;  %s622_s1 = inlined_call_operand.vmem [shape: f32[1,32], index: 1, kind: input, shape index: {}]   ;;  %s623_s2 = inlined_call_operand.vmem [shape: f32[1,32], index: 2, kind: input, shape index: {}]   ;;  %s624_s5 = inlined_call_operand.vmem [shape: bf16[128,128], index: 5, kind: input, shape index: {}]   ;;  %s625_s7 = inlined_call_operand.vmem [shape: bf16[128,128], index: 7, kind: input, shape index: {}]   ;;  %s626_s4 = inlined_call_operand.vmem [shape: f32[1,128], index: 4, kind: input, shape index: {}]   ;;  %s627_s6 = inlined_call_operand.vmem [shape: f32[1,128], index: 6, kind: input, shape index: {}]   ;;  %s628_s8 = inlined_call_operand.vmem [shape: f32[1,128], index: 8, kind: input, shape index: {}]   ;;  %s629_s9 = inlined_call_operand.vmem [shape: f32[8,128], index: 9, kind: output, shape index: {}]  }
   0x1   :  { %399 = vmatprep.subr.bf16.mxu0 %v469_v0  ;;  %v449_v1 = vld [vmem:[%s620_s3 + $0x8] sm:$0xff]   ;;  %403 = vmatprep.mubr.msk.bf16.mxu0 %vm470_vm0, %v469_v0  ;;  %v450_v2 = vld [vmem:[%s620_s3] sm:$0xff]   ;;  %v451_v7 = vld [vmem:[%s624_s5 + $0x38] sm:$0xff]  }
   0x2   :  { %407 = vmatprep.subr.bf16.mxu1 %v469_v0  ;;  %423 = vmatprep.mubr.msk.bf16.mxu1 %vm470_vm0, %v469_v0  ;;  %v33_v3 = vld [vmem:[%s621_s0] sm:$0xff]  ;;  %v452_v9 = vld [vmem:[%s624_s5 + $0x30] sm:$0xff]   ;;  %v453_v11 = vld [vmem:[%s624_s5 + $0x28] sm:$0xff]  }
   0x3   :  { %400 = vmatpush3.bf16.msra.mxu0 %v449_v1  ;;  %v354_v4 = vld [vmem:[%s622_s1] ss:$0 sm:$0xff]  ;;  %408 = vmatpush3.bf16.msra.mxu1 %v451_v7  ;;  %v455_v13 = vld [vmem:[%s624_s5 + $0x18] sm:$0xff]   ;;  %v456_v14 = vld [vmem:[%s624_s5 + $0x10] sm:$0xff]  }
   0x4   :  { %v355_v5 = vld [vmem:[%s623_s2] ss:$0 sm:$0xff]  ;;  %401 = vmatprep.subr.bf16.mxu0 %v469_v0  ;;  %v41_v6 = vmul.f32 %v354_v4, %v33_v3  ;;  %409 = vmatprep.subr.bf16.mxu1 %v469_v0  ;;  %v457_v15 = vld [vmem:[%s624_s5 + $0x8] sm:$0xff]   ;;  %v459_v17 = vld [vmem:[%s625_s7 + $0x38] sm:$0xff]  }
   0x5   :  { %v454_v12 = vld [vmem:[%s624_s5 + $0x20] sm:$0xff]   ;;  %v460_v18 = vld [vmem:[%s625_s7 + $0x30] sm:$0xff]   ;;  %v461_v19 = vld [vmem:[%s625_s7 + $0x28] sm:$0xff]  }
   0x6   :  { %v49_v8 = vadd.f32 %v355_v5, %v41_v6  ;;  %v458_v16 = vld [vmem:[%s624_s5] sm:$0xff]   ;;  %v463_v21 = vld [vmem:[%s625_s7 + $0x18] sm:$0xff]   ;;  %v464_v22 = vld [vmem:[%s625_s7 + $0x10] sm:$0xff]  }
   0x7   :  { %402 = vmatpush3.bf16.msra.mxu0 %v450_v2  ;;  %410 = vmatpush3.bf16.msra.mxu1 %v452_v9  ;;  %v462_v20 = vld [vmem:[%s625_s7 + $0x20] sm:$0xff]   ;;  %v465_v32 = vld [vmem:[%s625_s7 + $0x8] sm:$0xff]  }
   0x8   :  { %v50_v10 = vpack.c.bf16 %v49_v8, %v49_v8  ;;  %427 = vmatprep.subr.bf16.mxu0 %v469_v0  ;;  %411 = vmatprep.subr.bf16.mxu1 %v469_v0  ;;  %v356_v23 = vld [vmem:[%s626_s4] ss:$0 sm:$0xff] }
   0x9   :  { %v466_v33 = vld [vmem:[%s625_s7] sm:$0xff]  }
   0xa   :  { %404 = vmatmul.mubr.msk.bf16.vlgmr.msra.gmra.mxu0 %vm74_vm1, %v50_v10  ;;  %v360_v34 = vld [vmem:[%s627_s6] ss:$0 sm:$0xff] }
   0xb   :  { %443 = vmatprep.mubr.msk.bf16.mxu0 %vm470_vm0, %v469_v0  ;;  %412 = vmatpush3.bf16.msra.mxu1 %v453_v11  ;;  %v369_v43 = vld [vmem:[%s628_s8] ss:$0 sm:$0xff] }
   0xc   :  { %413 = vmatprep.subr.bf16.mxu1 %v469_v0  ;;  %428 = vmatpush3.bf16.msra.mxu0 %v459_v17 }
   0xd   :  { %429 = vmatprep.subr.bf16.mxu0 %v469_v0 }
   0xf   :  { %414 = vmatpush3.bf16.msra.mxu1 %v454_v12 }
  0x10   :  { %415 = vmatprep.subr.bf16.mxu1 %v469_v0  ;;  %430 = vmatpush3.bf16.msra.mxu0 %v460_v18 }
  0x11   :  { %431 = vmatprep.subr.bf16.mxu0 %v469_v0 }
  0x13   :  { %416 = vmatpush3.bf16.msra.mxu1 %v455_v13 }
  0x14   :  { %417 = vmatprep.subr.bf16.mxu1 %v469_v0  ;;  %432 = vmatpush3.bf16.msra.mxu0 %v461_v19 }
  0x15   :  { %433 = vmatprep.subr.bf16.mxu0 %v469_v0 }
  0x17   :  { %418 = vmatpush3.bf16.msra.mxu1 %v456_v14 }
  0x18   :  { %419 = vmatprep.subr.bf16.mxu1 %v469_v0  ;;  %434 = vmatpush3.bf16.msra.mxu0 %v462_v20 }
  0x19   :  { %435 = vmatprep.subr.bf16.mxu0 %v469_v0 }
  0x1b   :  { %420 = vmatpush3.bf16.msra.mxu1 %v457_v15 }
  0x1c   :  { %421 = vmatprep.subr.bf16.mxu1 %v469_v0  ;;  %436 = vmatpush3.bf16.msra.mxu0 %v463_v21 }
  0x1d   :  { %437 = vmatprep.subr.bf16.mxu0 %v469_v0 }
  0x1f   :  { %422 = vmatpush3.bf16.msra.mxu1 %v458_v16 }
  0x20   :  { %438 = vmatpush3.bf16.msra.mxu0 %v464_v22 }
  0x21   :  { %439 = vmatprep.subr.bf16.mxu0 %v469_v0 }
  0x24   :  { %440 = vmatpush3.bf16.msra.mxu0 %v465_v32 }
  0x25   :  { %441 = vmatprep.subr.bf16.mxu0 %v469_v0 }
  0x28   :  { %442 = vmatpush3.bf16.msra.mxu0 %v466_v33 }
  0xca   :  { %v112_v24 = vpop.f32.mrf.mxu0 }
  0xcb   :  { %v113_v25 = vadd.f32 %v356_v23, %v112_v24 }
  0xcc   :  { %v405_v26 = vpop.f32.mrf.mxu0 }
  0xcd   :  { %vm118_vm2 = vcmp.gt.f32.partialorder %v113_v25, 0.0  ;;  %v119_v27 = vmul.f32 0.01, %v113_v25 }
  0xce   :  { %v115_v28 = vpop.f32.mrf.mxu0 }
  0xcf   :  { %v120_v29 = vsel %vm118_vm2, %v113_v25, %v119_v27 }
  0xd0   :  { %v406_v30 = vpop.f32.mrf.mxu0  ;;  %v121_v31 = vpack.c.bf16 %v120_v29, %v120_v29 }
  0xd2   :  { %424 = vmatmul.mubr.bf16.vlgmr.msra.gmra.mxu1 %v121_v31 }
 0x192   :  { %v227_v35 = vpop.f32.mrf.mxu1 }
 0x193   :  { %v228_v36 = vadd.f32 %v360_v34, %v227_v35 }
 0x194   :  { %v425_v37 = vpop.f32.mrf.mxu1 }
 0x195   :  { %vm233_vm3 = vcmp.gt.f32.partialorder %v228_v36, 0.0  ;;  %v234_v38 = vmul.f32 0.01, %v228_v36 }
 0x196   :  { %v230_v39 = vpop.f32.mrf.mxu1 }
 0x197   :  { %v235_v40 = vsel %vm233_vm3, %v228_v36, %v234_v38 }
 0x198   :  { %v236_v41 = vpack.c.bf16 %v235_v40, %v235_v40  ;;  %v426_v42 = vpop.f32.mrf.mxu1 }
 0x19a   :  { %444 = vmatmul.mubr.bf16.vlgmr.msra.gmra.mxu0 %v236_v41 }
 0x25a   :  { %v342_v44 = vpop.f32.mrf.mxu0 }
 0x25b   :  { %v343_v45 = vadd.f32 %v369_v43, %v342_v44 }
 0x25c   :  { %v445_v46 = vpop.f32.mrf.mxu0 }
 0x25d   :  { %467 = vtanh.f32 %v343_v45 }
 0x25e   :  { %v345_v47 = vpop.f32.mrf.mxu0 }
 0x260   :  { %v446_v48 = vpop.f32.mrf.mxu0 }
 0x26a   :  { %v468_v49 = vpop.eup %467 }
 0x26b   :  { %349 = vst [vmem:[%s629_s9] sm:$0xff] %v468_v49 }

</bundles_post_ra>
